<compile_context>
chip_gen: v7x
topology: tpu7x:2x2x1
jax: 0.10.0
libtpu: 0.0.40
codegen_flags: <defaults>
</compile_context>

<pallas_src>
import jax
import jax.numpy as jnp
from jax.experimental import pallas as pl
from jax.experimental.pallas import tpu as pltpu


def _round_up(x, m):
    return (x + m - 1) // m * m


def _fusion_kernel(g_ref, l_ref, wg_ref, wl_ref, b_ref, o_ref):
    """One (tb, Dp) batch tile.

    g_ref/l_ref/o_ref: (tb, Dp) activation tiles.
    wg_ref/wl_ref:     (Dp, Dp) split gate weights already in (K, N) layout
                       (i.e. W[:, :D].T and W[:, D:].T), VMEM-resident.
    b_ref:             (1, Dp) bias, VMEM-resident.
    """
    g = g_ref[...]
    l = l_ref[...]

    mm_dtype = wg_ref.dtype  # allows bf16 matmul operands (v5e) with f32 acc
    # logits = g @ W_gT + l @ W_lT + b   (== cat([g, l]) @ W.T + b)
    logits = jnp.dot(g.astype(mm_dtype), wg_ref[...],
                     preferred_element_type=jnp.float32)
    logits = logits + jnp.dot(l.astype(mm_dtype), wl_ref[...],
                              preferred_element_type=jnp.float32)
    logits = logits + b_ref[...].astype(jnp.float32)

    gate = jax.nn.sigmoid(logits)                       # EUP path
    l32 = l.astype(jnp.float32)
    out = l32 + gate * (g.astype(jnp.float32) - l32)    # gate*g + (1-gate)*l
    o_ref[...] = out.astype(o_ref.dtype)


def _pick_batch_tile(B, Dp, itemsize, *, target_block_bytes=4 << 20, min_steps=4):
    """Batch tile sized for ~target_block_bytes per input block, 8-aligned,
    and capped so the grid has >= min_steps steps when B allows (needed for
    DMA/compute overlap and for v7x's two TensorCores to share the grid)."""
    tb = max(8, (target_block_bytes // (Dp * itemsize)) // 8 * 8)
    if B >= min_steps * 8:
        tb = min(tb, max(8, (B // min_steps) // 8 * 8))
    tb = min(tb, _round_up(B, 8))
    return tb


def global_local_fusion(global_emb, local_emb, weight, bias, *,
                        block_b=None, matmul_dtype=None):
    """GlobalLocalFusion forward.

    weight: (D, 2D) nn.Linear layout; bias: (D,).
    block_b: optional batch-tile override (rounded to a multiple of 8).
    matmul_dtype: optional dtype for matmul operands (e.g. jnp.bfloat16 on
      v5e); accumulation, sigmoid and the blend stay in float32.
    """
    B, D = global_emb.shape
    assert local_emb.shape == (B, D)
    assert weight.shape == (D, 2 * D) and bias.shape == (D,)

    # ---- one-time layout prep, outside the hot loop ------------------------
    # combined @ W.T == g @ W[:, :D].T + l @ W[:, D:].T
    w_g = weight[:, :D].T                      # (D, D), (K, N) layout
    w_l = weight[:, D:].T                      # (D, D)
    if matmul_dtype is not None:
        w_g = w_g.astype(matmul_dtype)
        w_l = w_l.astype(matmul_dtype)

    itemsize = jnp.dtype(global_emb.dtype).itemsize
    w_itemsize = jnp.dtype(w_g.dtype).itemsize

    # Lane-dense feature dim (multiple of 128) -> unmasked vst stores.
    Dp = _round_up(D, 128)

    if block_b is not None:
        tb = max(8, _round_up(int(block_b), 8))
        tb = min(tb, _round_up(B, 8))
    else:
        tb = _pick_batch_tile(B, Dp, itemsize)

    Bp = _round_up(B, tb)                       # cdiv-style grid via padding
    grid = (Bp // tb,)

    g, l = global_emb, local_emb
    if (Bp, Dp) != (B, D):
        g = jnp.pad(g, ((0, Bp - B), (0, Dp - D)))
        l = jnp.pad(l, ((0, Bp - B), (0, Dp - D)))
    if Dp != D:
        w_g = jnp.pad(w_g, ((0, Dp - D), (0, Dp - D)))
        w_l = jnp.pad(w_l, ((0, Dp - D), (0, Dp - D)))
        b2d = jnp.pad(bias, (0, Dp - D)).reshape(1, Dp)
    else:
        b2d = bias.reshape(1, D)

    # ---- VMEM budget: double-buffered activations + single-buffered weights.
    needed = (2 * 3 * tb * Dp * itemsize                    # g, l, out (x2 bufs)
              + 2 * Dp * Dp * w_itemsize                    # w_g, w_l (x1 buf)
              + Dp * jnp.dtype(b2d.dtype).itemsize)         # bias
    vmem_limit = int(min(max(needed * 5 // 4, 32 << 20), 100 << 20))

    cost = pl.CostEstimate(
        flops=4 * Bp * Dp * Dp + 5 * Bp * Dp,
        transcendentals=Bp * Dp,
        bytes_accessed=3 * Bp * Dp * itemsize + 2 * Dp * Dp * w_itemsize
        + Dp * jnp.dtype(b2d.dtype).itemsize,
    )

    out = pl.pallas_call(
        _fusion_kernel,
        out_shape=jax.ShapeDtypeStruct((Bp, Dp), global_emb.dtype),
        grid_spec=pltpu.PrefetchScalarGridSpec(
            num_scalar_prefetch=0,
            grid=grid,
            in_specs=[
                pl.BlockSpec((tb, Dp), lambda i: (i, 0)),    # global tile
                pl.BlockSpec((tb, Dp), lambda i: (i, 0)),    # local tile
                pl.BlockSpec((Dp, Dp), lambda i: (0, 0),     # W_gT, resident
                             pipeline_mode=pl.Buffered(1)),
                pl.BlockSpec((Dp, Dp), lambda i: (0, 0),     # W_lT, resident
                             pipeline_mode=pl.Buffered(1)),
                pl.BlockSpec((1, Dp), lambda i: (0, 0),      # bias, resident
                             pipeline_mode=pl.Buffered(1)),
            ],
            out_specs=pl.BlockSpec((tb, Dp), lambda i: (i, 0)),
        ),
        compiler_params=pltpu.CompilerParams(
            # Batch tiles are independent -> v7x's 2 TensorCores split them.
            dimension_semantics=("parallel",),
            vmem_limit_bytes=vmem_limit,
        ),
        cost_estimate=cost,
    )(g, l, w_g, w_l, b2d)

    if (Bp, Dp) != (B, D):
        out = out[:B, :D]
    return out


def _reference(global_emb, local_emb, weight, bias):
    combined = jnp.concatenate([global_emb, local_emb], axis=1)
    gate = jax.nn.sigmoid(combined @ weight.T + bias)
    return gate * global_emb + (1.0 - gate) * local_emb


if __name__ == "__main__":
    # Lane-dense demo shapes (D multiple of 128); the tile picker chooses
    # tb=64 here, giving a 4-step pipelined grid even at this small batch.
    B, D = 256, 128

    key = jax.random.PRNGKey(0)
    kg, kl, kw, kb = jax.random.split(key, 4)

    global_emb = jax.random.normal(kg, (B, D), dtype=jnp.float32)
    local_emb = jax.random.normal(kl, (B, D), dtype=jnp.float32)

    # nn.Linear-shaped parameters: W (D, 2D), b (D,)
    bound = 1.0 / jnp.sqrt(2.0 * D)
    weight = jax.random.uniform(kw, (D, 2 * D), minval=-bound, maxval=bound,
                                dtype=jnp.float32)
    bias = jax.random.uniform(kb, (D,), minval=-bound, maxval=bound,
                              dtype=jnp.float32)

    out = global_local_fusion(global_emb, local_emb, weight, bias)
    out = jax.block_until_ready(out)

    ref = _reference(global_emb, local_emb, weight, bias)
    assert out.shape == (B, D)
    assert jnp.allclose(out, ref, atol=2e-5, rtol=2e-5), "mismatch vs reference"

    print("KERNEL_OK")
</pallas_src>

<mosaic_0001>
module attributes {stable_mosaic.version = 11 : i64} {
  func.func @_fusion_kernel(%arg0: i32, %arg1: memref<64x128xf32, #tpu.memory_space<vmem>>, %arg2: memref<64x128xf32, #tpu.memory_space<vmem>>, %arg3: memref<128x128xf32, #tpu.memory_space<vmem>>, %arg4: memref<128x128xf32, #tpu.memory_space<vmem>>, %arg5: memref<1x128xf32, #tpu.memory_space<vmem>>, %arg6: memref<64x128xf32, #tpu.memory_space<vmem>>) attributes {dimension_semantics = [#tpu.dimension_semantics<parallel>], iteration_bounds = array<i64: 4>, scalar_prefetch = 0 : i64, scratch_operands = 0 : i64, tpu.core_type = #tpu.core_type<tc>, window_params = [{transform_indices = @transform_0, window_bounds = array<i64: 64, 128>}, {transform_indices = @transform_1, window_bounds = array<i64: 64, 128>}, {pipeline_mode = #tpu.pipeline_mode<synchronous>, transform_indices = @transform_2, window_bounds = array<i64: 128, 128>}, {pipeline_mode = #tpu.pipeline_mode<synchronous>, transform_indices = @transform_3, window_bounds = array<i64: 128, 128>}, {pipeline_mode = #tpu.pipeline_mode<synchronous>, transform_indices = @transform_4, window_bounds = array<i64: 1, 128>}, {transform_indices = @transform_5, window_bounds = array<i64: 64, 128>}]} {
    %c0 = arith.constant 0 : index
    %c0_0 = arith.constant 0 : index
    %0 = vector.load %arg1[%c0, %c0_0] : memref<64x128xf32, #tpu.memory_space<vmem>>, vector<64x128xf32>
    %c0_1 = arith.constant 0 : index
    %c0_2 = arith.constant 0 : index
    %1 = vector.load %arg2[%c0_1, %c0_2] : memref<64x128xf32, #tpu.memory_space<vmem>>, vector<64x128xf32>
    %c0_3 = arith.constant 0 : index
    %c0_4 = arith.constant 0 : index
    %2 = vector.load %arg3[%c0_3, %c0_4] : memref<128x128xf32, #tpu.memory_space<vmem>>, vector<128x128xf32>
    %cst = arith.constant dense<0.000000e+00> : vector<64x128xf32>
    %3 = tpu.matmul %0, %2, %cst {dimension_numbers = #tpu.dot_dimension_numbers<[1], [0], [0], [1], [0, 0, 1, 1], [], []>} : vector<64x128xf32>, vector<128x128xf32>, vector<64x128xf32> -> vector<64x128xf32>
    %c0_5 = arith.constant 0 : index
    %c0_6 = arith.constant 0 : index
    %4 = vector.load %arg4[%c0_5, %c0_6] : memref<128x128xf32, #tpu.memory_space<vmem>>, vector<128x128xf32>
    %cst_7 = arith.constant dense<0.000000e+00> : vector<64x128xf32>
    %5 = tpu.matmul %1, %4, %cst_7 {dimension_numbers = #tpu.dot_dimension_numbers<[1], [0], [0], [1], [0, 0, 1, 1], [], []>} : vector<64x128xf32>, vector<128x128xf32>, vector<64x128xf32> -> vector<64x128xf32>
    %6 = arith.addf %3, %5 : vector<64x128xf32>
    %c0_8 = arith.constant 0 : index
    %c0_9 = arith.constant 0 : index
    %7 = vector.load %arg5[%c0_8, %c0_9] : memref<1x128xf32, #tpu.memory_space<vmem>>, vector<1x128xf32>
    %8 = vector.broadcast %7 : vector<1x128xf32> to vector<64x128xf32>
    %9 = arith.addf %6, %8 : vector<64x128xf32>
    %10 = arith.negf %9 : vector<64x128xf32>
    %11 = math.exp %10 : vector<64x128xf32>
    %cst_10 = arith.constant 1.000000e+00 : f32
    %12 = vector.broadcast %cst_10 : f32 to vector<64x128xf32>
    %13 = arith.addf %12, %11 : vector<64x128xf32>
    %14 = arith.divf %12, %13 : vector<64x128xf32>
    %15 = arith.subf %0, %1 : vector<64x128xf32>
    %16 = arith.mulf %14, %15 : vector<64x128xf32>
    %17 = arith.addf %1, %16 : vector<64x128xf32>
    %c0_11 = arith.constant 0 : index
    %c0_12 = arith.constant 0 : index
    %18 = vector.load %arg6[%c0_11, %c0_12] : memref<64x128xf32, #tpu.memory_space<vmem>>, vector<64x128xf32>
    tpu.vector_store %arg6[%c0_11, %c0_12], %17 {strides = array<i32>} : memref<64x128xf32, #tpu.memory_space<vmem>>, vector<64x128xf32>,
    return
  }
  func.func @transform_0(%arg0: i32) -> (i32, i32) {
    %c0_i32 = arith.constant 0 : i32
    %c0_i32_0 = arith.constant 0 : i32
    return %arg0, %c0_i32 : i32, i32
  }
  func.func @transform_1(%arg0: i32) -> (i32, i32) {
    %c0_i32 = arith.constant 0 : i32
    %c0_i32_0 = arith.constant 0 : i32
    return %arg0, %c0_i32 : i32, i32
  }
  func.func @transform_2(%arg0: i32) -> (i32, i32) {
    %c0_i32 = arith.constant 0 : i32
    %c0_i32_0 = arith.constant 0 : i32
    %c0_i32_1 = arith.constant 0 : i32
    return %c0_i32, %c0_i32_0 : i32, i32
  }
  func.func @transform_3(%arg0: i32) -> (i32, i32) {
    %c0_i32 = arith.constant 0 : i32
    %c0_i32_0 = arith.constant 0 : i32
    %c0_i32_1 = arith.constant 0 : i32
    return %c0_i32, %c0_i32_0 : i32, i32
  }
  func.func @transform_4(%arg0: i32) -> (i32, i32) {
    %c0_i32 = arith.constant 0 : i32
    %c0_i32_0 = arith.constant 0 : i32
    %c0_i32_1 = arith.constant 0 : i32
    return %c0_i32, %c0_i32_0 : i32, i32
  }
  func.func @transform_5(%arg0: i32) -> (i32, i32) {
    %c0_i32 = arith.constant 0 : i32
    %c0_i32_0 = arith.constant 0 : i32
    return %arg0, %c0_i32 : i32, i32
  }
}

</mosaic_0001>

<bundles_post_ra>
// kernel: tpu_custom_call.1
= control target key start
LH: loop header
LB: loop body
LE: loop exit
PB: predicated region body
PF: predicated region fallthrough
CT: control target
= control target key end

     0   :  { %s1776_s0 = inlined_call_operand.hbm [shape: f32[256,128], index: 0, kind: input, shape index: {}]   ;;  %s1777_s1 = inlined_call_operand.hbm [shape: f32[256,128], index: 1, kind: input, shape index: {}]   ;;  %s1778_s2 = inlined_call_operand.hbm [shape: f32[128,128], index: 2, kind: input, shape index: {}]   ;;  %s1779_s3 = inlined_call_operand.hbm [shape: f32[128,128], index: 3, kind: input, shape index: {}]   ;;  %s1780_s4 = inlined_call_operand.vmem [shape: f32[1,128], index: 4, kind: input, shape index: {}]   ;;  %s1781_s5 = inlined_call_operand.hbm [shape: f32[256,128], index: 5, kind: output, shape index: {}]  }
   0x1   :  { %1789 = sst [smem:[#allocation16_spill]] %s1776_s0 }
   0x2   :  { %1790 = sst [smem:[#allocation17_spill]] %s1778_s2 }
   0x3   :  { %10 = vsyncpa [#allocation3], 0 }
   0x4   :  { %12 = vsyncpa [#allocation3 + $0x1], 0 }
   0x5   :  { %13 = vsyncpa [#allocation6], 0 }
   0x6   :  { %15 = vsyncpa [#allocation6 + $0x1], 0 }
   0x7   :  { %16 = vsyncpa [#allocation9], 0 }
   0x8   :  { %17 = vsyncpa [#allocation4], 0 }
   0x9   :  { %19 = vsyncpa [#allocation4 + $0x1], 0  ;;  %s1382_s18 = smov 0   ;;  %s1384_s19 = smov 0  }
   0xa   :  { %s1386_s20 = smov 0   ;;  %s1388_s21 = smov 0  }
   0xb LB: > { %s1403_s22 = sadd.s32 4294967295, %s1341_s21   ;;  %s797_s23 = sadd.s32 4294967294, %s1341_s21   ;;  %s1341_s21 = sphi %s1388_s21, %s1812_s21   ;;  %s1337_s20 = sphi %s1386_s20, %s1811_s20   ;;  %s1333_s19 = sphi %s1384_s19, %s1810_s19   ;;  %s1329_s18 = sphi %s1382_s18, %s1809_s18  }
   0xc   : > { %p45_p0 = scmp.ne.s32.totalorder %s1333_s19, %s1329_s18  ;;  %p1782_p1 = scmp.eq.s32.totalorder %s1403_s22, 0 }
   0xd   : > { %p164_p3 = scmp.eq.s32.totalorder %s797_s23, 3  ;;  %p798_p5 = scmp.ge.s32.totalorder %s1341_s21, 1 }
   0xe   : > { %p1412_p4 = por %p1782_p1, %p45_p0  ;;  %p171_p7 = scmp.lt.s32.totalorder %s1341_s21, 5 }
   0xf   : > { %p1417_p6 = por %p164_p3, %p45_p0  ;;  %s1343_s27 = smov [#allocation7]  }
  0x10   : > { %s1791_s24 = scalar_select %p1412_p4, 1, 0 }
  0x11   : > { %s1792_s25 = scalar_select %p1417_p6, 1, 0 }
  0x12   : > { %p1422_p8 = pnand %p798_p5, %p171_p7  ;;  %s183_s28 = sshll.u32 %s1343_s27, 4  ;;  %s184_s28 = int_to_ptr.vmem [resolvable:$true] %s183_s28 }
  0x13   : > { %s1344_s30 = smov [#allocation8]   ;;  %s1795_s2 = sld [smem:[#allocation17_spill]] }
  0x14   : > { %s1793_s26 = scalar_select %p1422_p8, 1, 0 }
  0x15   : > { %p1053_p9 = pneg %p1422_p8  ;;  %s196_s6 = sshll.u32 %s1344_s30, 4  ;;  %s1434_s6 = int_to_ptr.vmem [resolvable:$true] %s196_s6 }
  0x17   : > { %p1430_p10 = pnand %p1053_p9, %p1782_p1 }
  0x19   : > { %s1147_s9 = scalar_lea.hbm %s1795_s2, 2048  ;;  %p1149_p12 = pneg %p1430_p10 }
  0x1a   : > { %p1148_p11 = scmp.ne.s32.totalorder %s1795_s2, %s1147_s9  ;;  %p1154_p3 = scmp.lt.u32.totalorder %s1147_s9, %s1795_s2 }
  0x1c   : > { %p1150_p13 = pnand %p1149_p12, %p1148_p11 }
  0x1e   : > { %p1151_p0 = pneg %p1150_p13 }
  0x20   : > { %p1156_p5 = pnand %p1154_p3, %p1151_p0 }
  0x22   : > { %1159 = shalt.err (!%p1156_p5)
}
  0x23   : > { %s1160_s14 = scalar_lea.vmem %s184_s28, 2048  ;;  %p1168_p2 = scmp.lt.s32.totalorder %s184_s28, %s184_s28 }
  0x24   : > { %p1161_p7 = scmp.ne.s32.totalorder %s184_s28, %s1160_s14  ;;  %p1169_p6 = scmp.lt.s32.totalorder %s1160_s14, %s1160_s14 }
  0x26   : > { %p1163_p9 = pnand %p1161_p7, %p1149_p12  ;;  %p1170_p4 = por %p1169_p6, %p1168_p2 }
  0x28   : > { %p1164_p1 = pneg %p1163_p9 }
  0x2a   : > { %p1171_p8 = pnand %p1170_p4, %p1164_p1 }
  0x2c   : > { %1174 = shalt.err (!%p1171_p8)
}
  0x2d   : > { %s1785_s15 = smov 128   ;;  %s1787_s16 = smov 8  }
  0x2e   : > { %1056 = dma.hbm_to_vmem [thread:$0]  (!%p1430_p10), %s1795_s2, 2048, %s184_s28, [#allocation6], %s1785_s15, %s1785_s15, %s1787_s16  }
  0x2f   : > { %s1175_s7 = scalar_lea.hbm %s1779_s3, 2048 }
  0x30   : > { %p1176_p1 = scmp.ne.s32.totalorder %s1779_s3, %s1175_s7  ;;  %p1182_p6 = scmp.lt.u32.totalorder %s1175_s7, %s1779_s3 }
  0x32   : > { %p1178_p2 = pnand %p1176_p1, %p1149_p12 }
  0x34   : > { %p1179_p4 = pneg %p1178_p2 }
  0x36   : > { %p1184_p8 = pnand %p1182_p6, %p1179_p4 }
  0x38   : > { %1187 = shalt.err (!%p1184_p8)
}
  0x39   : > { %s1188_s28 = scalar_lea.vmem %s1434_s6, 2048  ;;  %p1196_p3 = scmp.lt.s32.totalorder %s1434_s6, %s1434_s6 }
  0x3a   : > { %p1189_p11 = scmp.ne.s32.totalorder %s1434_s6, %s1188_s28  ;;  %p1197_p5 = scmp.lt.s32.totalorder %s1188_s28, %s1188_s28 }
  0x3c   : > { %p1191_p13 = pnand %p1189_p11, %p1149_p12  ;;  %p1198_p7 = por %p1197_p5, %p1196_p3 }
  0x3e   : > { %p1192_p0 = pneg %p1191_p13 }
  0x40   : > { %p1199_p9 = pnand %p1198_p7, %p1192_p0 }
  0x42   : > { %1202 = shalt.err (!%p1199_p9)
}
  0x43   : > { %1059 = dma.hbm_to_vmem [thread:$0]  (!%p1430_p10), %s1779_s3, 2048, %s1434_s6, [#allocation9], %s1785_s15, %s1785_s15, %s1787_s16  }
  0x44   : > { %s1490_s29 = sadd.s32 1, %s1341_s21   ;;  %s32_s14 = sadd.s32 1, %s1337_s20 }
  0x45   : > { %s29_s17 = ssub.s32 %s1341_s21, %s1490_s29  ;;  %p39_p12 = scmp.ne.s32.totalorder %s1337_s20, %s1333_s19 }
  0x46   : > { %p30_p1 = scmp.eq.s32.totalorder %s29_s17, 0  ;;  %p40_p2 = scmp.eq.s32.totalorder %s1341_s21, 0 }
  0x47   : > { %p1796_p4 = scmp.eq.s32.totalorder %s1403_s22, 3  ;;  %p1073_p8 = scmp.lt.s32.totalorder %s1341_s21, 4 }
  0x48   : > { %s1506_s27 = scalar_select %p30_p1, %s1337_s20, %s32_s14  }
  0x49   : > { %p1500_p6 = por %p1796_p4, %p39_p12  ;;  %p41_p11 = por %p40_p2, %p39_p12 }
  0x4a   : > { %s213_s30 = sand.u32 1, %s1337_s20   ;;  %s828_s6 = sshll.u32 %s1341_s21, 10 }
  0x4b   : > { %s802_s7 = sshll.u32 %s213_s30, 6  ;;  %s1798_s0 = sld [smem:[#allocation16_spill]] }
  0x4c   : > { %s217_s11 = scalar_lea.vmem [#allocation2], %s802_s7  ;;  %p1517_p10 = pnand %p1073_p8, %p41_p11 }
  0x4d   : > { %s224_s28 = sshll.u32 %s217_s11, 4  ;;  %s1524_s17 = scalar_lea.hbm %s1777_s1, %s828_s6  ;;  %s1515_s28 = int_to_ptr.vmem [resolvable:$true] %s224_s28 }
  0x4e   : > { %s238_s8 = scalar_lea.vmem [#allocation5], %s802_s7  ;;  %s1528_s15 = scalar_lea.sflag [#allocation3], %s213_s30 }
  0x4f   : > { %s1526_s9 = sshll.u32 %s238_s8, 4  ;;  %p1205_p0 = pneg %p1517_p10  ;;  %s1560_s9 = int_to_ptr.vmem [resolvable:$true] %s1526_s9 }
  0x51   : > { %s1513_s10 = scalar_lea.hbm %s1798_s0, %s828_s6  ;;  %s1208_s13 = scalar_lea.hbm %s1798_s0, 4096 }
  0x52   : > { %s1203_s11 = scalar_lea.hbm %s1513_s10, 1024  ;;  %p1209_p7 = scmp.lt.u32.totalorder %s1513_s10, %s1798_s0 }
  0x53   : > { %p1204_p13 = scmp.ne.s32.totalorder %s1513_s10, %s1203_s11  ;;  %p1210_p9 = scmp.lt.u32.totalorder %s1208_s13, %s1203_s11 }
  0x54   : > { %p1212_p1 = scmp.lt.u32.totalorder %s1203_s11, %s1513_s10 }
  0x55   : > { %p1206_p3 = pnand %p1205_p0, %p1204_p13  ;;  %p1211_p12 = por %p1210_p9, %p1209_p7 }
  0x57   : > { %p1207_p5 = pneg %p1206_p3  ;;  %p1213_p2 = por %p1212_p1, %p1211_p12 }
  0x59   : > { %p1214_p4 = pnand %p1213_p2, %p1207_p5 }
  0x5b   : > { %1217 = shalt.err (!%p1214_p4)
}
  0x5c   : > { %s1218_s30 = scalar_lea.vmem %s1515_s28, 1024  ;;  %s1347_s2 = smov [#allocation2]  }
  0x5d   : > { %p1219_p8 = scmp.ne.s32.totalorder %s1515_s28, %s1218_s30  ;;  %s1223_s16 = sshll.u32 %s1347_s2, 4  ;;  %s1224_s16 = int_to_ptr.vmem [resolvable:$false] %s1223_s16 }
  0x5e   : > { %s1225_s7 = scalar_lea.vmem %s1224_s16, 2048  ;;  %p1226_p3 = scmp.lt.s32.totalorder %s1515_s28, %s1224_s16 }
  0x5f   : > { %p1221_p11 = pnand %p1219_p8, %p1205_p0  ;;  %p1227_p7 = scmp.lt.s32.totalorder %s1225_s7, %s1218_s30 }
  0x61   : > { %p1222_p13 = pneg %p1221_p11  ;;  %p1228_p9 = por %p1227_p7, %p1226_p3 }
  0x63   : > { %p1229_p12 = pnand %p1228_p9, %p1222_p13 }
  0x65   : > { %1232 = shalt.err (!%p1229_p12)
}
  0x66   : > { %s1800_s8 = smov 8   ;;  %s1801_s11 = smov 128  }
  0x67   : > { %1063 = dma.hbm_to_vmem [thread:$0]  (!%p1517_p10), %s1513_s10, 1024, %s1515_s28, %s1528_s15, %s1801_s11, %s1801_s11, %s1800_s8  }
  0x68   : > { %s234_s13 = sand.u32 1, %s1341_s21   ;;  %s1233_s6 = scalar_lea.hbm %s1524_s17, 1024 }
  0x69   : > { %s1563_s14 = scalar_lea.sflag [#allocation6], %s234_s13  ;;  %p1234_p5 = scmp.ne.s32.totalorder %s1524_s17, %s1233_s6 }
  0x6a   : > { %s1238_s16 = scalar_lea.hbm %s1777_s1, 4096  ;;  %p1239_p4 = scmp.lt.u32.totalorder %s1524_s17, %s1777_s1 }
  0x6b   : > { %p1236_p1 = pnand %p1234_p5, %p1205_p0  ;;  %p1240_p8 = scmp.lt.u32.totalorder %s1238_s16, %s1233_s6 }
  0x6c   : > { %p1242_p13 = scmp.lt.u32.totalorder %s1233_s6, %s1524_s17 }
  0x6d   : > { %p1237_p2 = pneg %p1236_p1  ;;  %p1241_p11 = por %p1240_p8, %p1239_p4 }
  0x6f   : > { %p1243_p3 = por %p1242_p13, %p1241_p11 }
  0x71   : > { %p1244_p7 = pnand %p1243_p3, %p1237_p2 }
  0x73   : > { %1247 = shalt.err (!%p1244_p7)
}
  0x74   : > { %s1248_s15 = scalar_lea.vmem %s1560_s9, 1024  ;;  %s1348_s10 = smov [#allocation5]  }
  0x75   : > { %p1249_p9 = scmp.ne.s32.totalorder %s1560_s9, %s1248_s15  ;;  %s1253_s28 = sshll.u32 %s1348_s10, 4  ;;  %s1254_s28 = int_to_ptr.vmem [resolvable:$false] %s1253_s28 }
  0x76   : > { %s1255_s0 = scalar_lea.vmem %s1254_s28, 2048  ;;  %p1256_p1 = scmp.lt.s32.totalorder %s1560_s9, %s1254_s28 }
  0x77   : > { %p1251_p12 = pnand %p1249_p9, %p1205_p0  ;;  %p1257_p4 = scmp.lt.s32.totalorder %s1255_s0, %s1248_s15 }
  0x79   : > { %p1252_p5 = pneg %p1251_p12  ;;  %p1258_p8 = por %p1257_p4, %p1256_p1 }
  0x7b   : > { %p1259_p11 = pnand %p1258_p8, %p1252_p5 }
  0x7d   : > { %1262 = shalt.err (!%p1259_p11)
}
  0x7e   : > { %1066 = dma.hbm_to_vmem [thread:$0]  (!%p1517_p10), %s1524_s17, 1024, %s1560_s9, %s1563_s14, %s1801_s11, %s1801_s11, %s1800_s8  }
  0x7f   : > { %p1802_p0 = scmp.ne.s32.totalorder %s1793_s26, 0 }
  0x80   : > { %s1595_s13 = sand.u32 (!%p1802_p0), 1, %s1333_s19   ;;  %p1803_p2 = scmp.ne.s32.totalorder (!%p1802_p0), %s1791_s24, 0 }
  0x81   : > { %257 = sbr.rel (%p1802_p0) target bundleno = 458 (0x1ca), region = 40  ;;  %s1598_s6 = sshll.u32 (!%p1802_p0), %s1595_s13, 6 }
  0x82   : > { %s260_s12 = scalar_lea.sflag (!%p1802_p0), [#allocation3], %s1595_s13  ;;  %s1602_s30 = scalar_lea.vmem (!%p1802_p0), [#allocation2], %s1598_s6 }
  0x88   : > { %1308 = dma.done.wait (%p1803_p2), %s260_s12, 1024  }
  0x89   : > { %1310 = vsyncadd (%p1803_p2), %s260_s12, 4294966272  ;;  %s268_s26 = sand.u32 1, %s1403_s22   ;;  %s1610_s9 = scalar_lea.vmem [#allocation5], %s1598_s6 }
  0x8a   : > { %s269_s17 = scalar_lea.sflag [#allocation6], %s268_s26 }
  0x8b   : > { %1312 = dma.done.wait (%p1803_p2), %s269_s17, 1024  }
  0x8c   : > { %1314 = vsyncadd (%p1803_p2), %s269_s17, 4294966272  ;;  %p1804_p10 = scmp.eq.s32.totalorder %s1403_s22, 0 }
  0x8e   : > { %1316 = dma.done.wait (%p1804_p10), [#allocation6], 2048   ;;  %p1805_p13 = pmov %p1804_p10 }
  0x8f   : > { %p1806_p3 = pmov %p1804_p10 }
  0x90   : > { %1318 = vsyncadd (%p1805_p13), [#allocation6], 4294965248 }
  0x91   : > { %1320 = dma.done.wait (%p1806_p3), [#allocation9], 2048   ;;  %p1807_p7 = pmov %p1806_p3 }
  0x92   : > { %v347_v0 = vld [vmem:[#allocation8] sm:$0xff]  ;;  %v348_v1 = vld [vmem:[#allocation8 + $0x8] sm:$0xff]  ;;  %v349_v5 = vld [vmem:[#allocation8 + $0x10] sm:$0xff]  ;;  %s1704_s11 = scalar_lea.vmem [#allocation10], %s1598_s6  ;;  %s830_s14 = sshll.u32 %s1403_s22, 10 }
  0x93   : > { %1322 = vsyncadd (%p1807_p7), [#allocation9], 4294965248  ;;  %v331_v2 = vld [vmem:[#allocation7] sm:$0xff]  ;;  %v967_v3 = vpack.c.bf16 %v348_v1, %v347_v0  ;;  %v332_v4 = vld [vmem:[#allocation7 + $0x8] sm:$0xff]  ;;  %s682_s2 = sshll.u32 %s1704_s11, 4  ;;  %s1729_s15 = scalar_lea.hbm %s1781_s5, %s830_s14  ;;  %s1731_s2 = int_to_ptr.vmem [resolvable:$true] %s682_s2 }
  0x94   : > { %v350_v6 = vld [vmem:[#allocation8 + $0x18] sm:$0xff]  ;;  %v999_v7 = vpack.c.bf16 %v332_v4, %v331_v2  ;;  %v333_v9 = vld [vmem:[#allocation7 + $0x10] sm:$0xff]  ;;  %v351_v11 = vld [vmem:[#allocation8 + $0x20] sm:$0xff]  ;;  %s669_s22 = scalar_lea.sflag [#allocation4], %s1595_s13  ;;  %s1263_s10 = scalar_lea.vmem %s1731_s2, 1024 }
  0x95   : > { %v971_v8 = vpack.c.bf16 %v350_v6, %v349_v5  ;;  %v334_v10 = vld [vmem:[#allocation7 + $0x18] sm:$0xff]  ;;  %968 = vmatprep.subr.bf16.mxu1 %v967_v3  ;;  %v352_v13 = vld [vmem:[#allocation8 + $0x28] sm:$0xff]  ;;  %v335_v14 = vld [vmem:[#allocation7 + $0x20] sm:$0xff]  ;;  %p1264_p9 = scmp.ne.s32.totalorder %s1731_s2, %s1263_s10  ;;  %s1349_s28 = smov [#allocation10]  }
  0x96   : > { %v1003_v12 = vpack.c.bf16 %v334_v10, %v333_v9  ;;  %v336_v15 = vld [vmem:[#allocation7 + $0x28] sm:$0xff]  ;;  %1000 = vmatprep.subr.bf16.mxu0 %v999_v7  ;;  %970 = vmatpush3.bf16.msra.mxu1 %v967_v3  ;;  %v975_v16 = vpack.c.bf16 %v352_v13, %v351_v11  ;;  %v353_v18 = vld [vmem:[#allocation8 + $0x30] sm:$0xff]  ;;  %v354_v19 = vld [vmem:[#allocation8 + $0x38] sm:$0xff]  ;;  %s1267_s0 = sshll.u32 %s1349_s28, 4  ;;  %s1268_s0 = int_to_ptr.vmem [resolvable:$false] %s1267_s0 }
  0x97   : > { %1002 = vmatpush3.bf16.msra.mxu0 %v999_v7  ;;  %972 = vmatprep.subr.bf16.mxu1 %v971_v8  ;;  %v1007_v17 = vpack.c.bf16 %v336_v15, %v335_v14  ;;  %v337_v20 = vld [vmem:[#allocation7 + $0x30] sm:$0xff]  ;;  %v338_v21 = vld [vmem:[#allocation7 + $0x38] sm:$0xff]  ;;  %v979_v22 = vpack.c.bf16 %v354_v19, %v353_v18  ;;  %v355_v24 = vld [vmem:[#allocation8 + $0x40] sm:$0xff]  ;;  %p1265_p12 = pnand %p1264_p9, %p1500_p6  ;;  %s1269_s6 = scalar_lea.vmem %s1268_s0, 2048 }
  0x98   : > { %1004 = vmatprep.subr.bf16.mxu0 %v1003_v12  ;;  %v1011_v23 = vpack.c.bf16 %v338_v21, %v337_v20  ;;  %v356_v25 = vld [vmem:[#allocation8 + $0x48] sm:$0xff]  ;;  %v1625_v26 = vld [vmem:[%s1610_s9] sm:$0xff]  ;;  %v357_v32 = vld [vmem:[#allocation8 + $0x50] sm:$0xff]  ;;  %p1270_p1 = scmp.lt.s32.totalorder %s1731_s2, %s1268_s0  ;;  %p1271_p4 = scmp.lt.s32.totalorder %s1269_s6, %s1263_s10 }
  0x99   : > { %v339_v27 = vld [vmem:[#allocation7 + $0x40] sm:$0xff]  ;;  %v340_v28 = vld [vmem:[#allocation7 + $0x48] sm:$0xff]  ;;  %911 = vmatprep.mubr.f32.mxu1 %v1625_v26  ;;  %v983_v30 = vpack.c.bf16 %v356_v25, %v355_v24  ;;  %v358_v33 = vld [vmem:[#allocation8 + $0x58] sm:$0xff]  ;;  %p1266_p5 = pneg %p1265_p12 }
  0x9a   : > { %974 = vmatpush3.bf16.msra.mxu1 %v971_v8  ;;  %v1629_v29 = vld [vmem:[%s1602_s30] sm:$0xff]  ;;  %v1015_v31 = vpack.c.bf16 %v340_v28, %v339_v27  ;;  %v341_v34 = vld [vmem:[#allocation7 + $0x50] sm:$0xff]  ;;  %v342_v35 = vld [vmem:[#allocation7 + $0x58] sm:$0xff]  ;;  %v987_v36 = vpack.c.bf16 %v358_v33, %v357_v32  ;;  %p1272_p8 = por %p1271_p4, %p1270_p1 }
  0x9b   : > { %1006 = vmatpush3.bf16.msra.mxu0 %v1003_v12  ;;  %976 = vmatprep.subr.bf16.mxu1 %v975_v16  ;;  %v1019_v37 = vpack.c.bf16 %v342_v35, %v341_v34  ;;  %v359_v38 = vld [vmem:[#allocation8 + $0x60] sm:$0xff]  ;;  %v360_v39 = vld [vmem:[#allocation8 + $0x68] sm:$0xff]  ;;  %v361_v44 = vld [vmem:[#allocation8 + $0x70] sm:$0xff] }
  0x9c   : > { %1008 = vmatprep.subr.bf16.mxu0 %v1007_v17  ;;  %955 = vmatprep.mubr.f32.mxu0 %v1629_v29  ;;  %v343_v40 = vld [vmem:[#allocation7 + $0x60] sm:$0xff]  ;;  %v344_v41 = vld [vmem:[#allocation7 + $0x68] sm:$0xff]  ;;  %v991_v42 = vpack.c.bf16 %v360_v39, %v359_v38  ;;  %v362_v45 = vld [vmem:[#allocation8 + $0x78] sm:$0xff]  ;;  %p1273_p11 = pnand %p1272_p8, %p1266_p5 }
  0x9d   : > { %v1023_v43 = vpack.c.bf16 %v344_v41, %v343_v40  ;;  %v345_v46 = vld [vmem:[#allocation7 + $0x70] sm:$0xff]  ;;  %v346_v47 = vld [vmem:[#allocation7 + $0x78] sm:$0xff]  ;;  %v995_v48 = vpack.c.bf16 %v362_v45, %v361_v44  ;;  %v1633_v50 = vld [vmem:[%s1610_s9 + $0x8] sm:$0xff] }
  0x9e   : > { %978 = vmatpush3.bf16.msra.mxu1 %v975_v16  ;;  %v1027_v49 = vpack.c.bf16 %v346_v47, %v345_v46  ;;  %v1636_v51 = vld [vmem:[%s1602_s30 + $0x8] sm:$0xff]  ;;  %v1639_v52 = vld [vmem:[%s1610_s9 + $0x10] sm:$0xff]  ;;  %v1648_v54 = vld [vmem:[%s1610_s9 + $0x18] sm:$0xff] }
  0x9f   : > { %1010 = vmatpush3.bf16.msra.mxu0 %v1007_v17  ;;  %980 = vmatprep.subr.bf16.mxu1 %v979_v22  ;;  %v1642_v53 = vld [vmem:[%s1602_s30 + $0x10] sm:$0xff]  ;;  %v1652_v55 = vld [vmem:[%s1602_s30 + $0x18] sm:$0xff]  ;;  %v1655_v56 = vld [vmem:[%s1610_s9 + $0x20] sm:$0xff] }
  0xa0   : > { %1012 = vmatprep.subr.bf16.mxu0 %v1011_v23  ;;  %v1658_v57 = vld [vmem:[%s1602_s30 + $0x20] sm:$0xff]  ;;  %v1664_v58 = vld [vmem:[%s1610_s9 + $0x28] sm:$0xff]  ;;  %v1671_v60 = vld [vmem:[%s1610_s9 + $0x30] sm:$0xff] }
  0xa1   : > { %v1668_v59 = vld [vmem:[%s1602_s30 + $0x28] sm:$0xff]  ;;  %v1674_v61 = vld [vmem:[%s1602_s30 + $0x30] sm:$0xff]  ;;  %v1680_v62 = vld [vmem:[%s1610_s9 + $0x38] sm:$0xff] }
  0xa2   : > { %982 = vmatpush3.bf16.msra.mxu1 %v979_v22  ;;  %v1684_v63 = vld [vmem:[%s1602_s30 + $0x38] sm:$0xff]  ;;  %v814_v2 = vld [vmem:[%s1780_s4] ss:$0 sm:$0xff] }
  0xa3   : > { %1014 = vmatpush3.bf16.msra.mxu0 %v1011_v23  ;;  %984 = vmatprep.subr.bf16.mxu1 %v983_v30 }
  0xa4   : > { %1016 = vmatprep.subr.bf16.mxu0 %v1015_v31 }
  0xa6   : > { %986 = vmatpush3.bf16.msra.mxu1 %v983_v30 }
  0xa7   : > { %1018 = vmatpush3.bf16.msra.mxu0 %v1015_v31  ;;  %988 = vmatprep.subr.bf16.mxu1 %v987_v36 }
  0xa8   : > { %1020 = vmatprep.subr.bf16.mxu0 %v1019_v37 }
  0xaa   : > { %990 = vmatpush3.bf16.msra.mxu1 %v987_v36 }
  0xab   : > { %1022 = vmatpush3.bf16.msra.mxu0 %v1019_v37  ;;  %992 = vmatprep.subr.bf16.mxu1 %v991_v42 }
  0xac   : > { %1024 = vmatprep.subr.bf16.mxu0 %v1023_v43 }
  0xae   : > { %994 = vmatpush3.bf16.msra.mxu1 %v991_v42 }
  0xaf   : > { %1026 = vmatpush3.bf16.msra.mxu0 %v1023_v43  ;;  %996 = vmatprep.subr.bf16.mxu1 %v995_v48 }
  0xb0   : > { %1028 = vmatprep.subr.bf16.mxu0 %v1027_v49 }
  0xb2   : > { %998 = vmatpush3.bf16.msra.mxu1 %v995_v48 }
  0xb3   : > { %1030 = vmatpush3.bf16.msra.mxu0 %v1027_v49 }
  0xb5   : > { %912 = vmatmul.mubr.f32.vlgmr.msra.gmra.mrb[0].mxu1 %v1633_v50 }
  0xb6   : > { %956 = vmatmul.mubr.f32.vlgmr.msra.gmra.mrb[0].mxu0 %v1636_v51  ;;  %914 = vmatprep.mubr.f32.mxu1 %v1639_v52 }
  0xb7   : > { %958 = vmatprep.mubr.f32.mxu0 %v1642_v53 }
  0xb9   : > { %915 = vmatmul.mubr.f32.gmra.mrb[2].mxu1 %v1648_v54 }
  0xba   : > { %959 = vmatmul.mubr.f32.gmra.mrb[2].mxu0 %v1652_v55  ;;  %917 = vmatprep.mubr.f32.mxu1 %v1655_v56 }
  0xbb   : > { %961 = vmatprep.mubr.f32.mxu0 %v1658_v57 }
  0xbd   : > { %918 = vmatmul.mubr.f32.gmra.mrb[4].mxu1 %v1664_v58 }
  0xbe   : > { %962 = vmatmul.mubr.f32.gmra.mrb[4].mxu0 %v1668_v59  ;;  %920 = vmatprep.mubr.f32.mxu1 %v1671_v60 }
  0xbf   : > { %964 = vmatprep.mubr.f32.mxu0 %v1674_v61 }
  0xc1   : > { %921 = vmatmul.mubr.f32.gmra.mrb[6].mxu1 %v1680_v62 }
  0xc2   : > { %965 = vmatmul.mubr.f32.gmra.mrb[6].mxu0 %v1684_v63 }
 0x188   : > { %v913_v0 = vpop.f32.mrb[0].mxu1 }
 0x189   : > { %v957_v1 = vpop.f32.mrb[0].mxu0  ;;  %v429_v3 = vpop.f32.mrb[1].mxu1 }
 0x18a   : > { %v540_v4 = vadd.f32 %v957_v1, %v913_v0  ;;  %v534_v5 = vpop.f32.mrb[1].mxu0 }
 0x18b   : > { %v535_v6 = vadd.f32 %v534_v5, %v429_v3 }
 0x18c   : > { %v581_v7 = vadd.f32 %v814_v2, %v540_v4  ;;  %v916_v8 = vpop.f32.mrb[2].mxu1 }
 0x18d   : > { %v580_v9 = vadd.f32 %v814_v2, %v535_v6  ;;  %v960_v10 = vpop.f32.mrb[2].mxu0  ;;  %v439_v11 = vpop.f32.mrb[3].mxu1  ;;  %v636_v6 = vsub.f32 %v1629_v29, %v1625_v26 }
 0x18e   : > { %v816_v12 = vmul.f32 -1.442695, %v581_v7  ;;  %v550_v13 = vadd.f32 %v960_v10, %v916_v8  ;;  %v544_v14 = vpop.f32.mrb[3].mxu0 }
 0x18f   : > { %v815_v15 = vmul.f32 -1.442695, %v580_v9  ;;  %v545_v16 = vadd.f32 %v544_v14, %v439_v11  ;;  %v639_v11 = vsub.f32 %v1652_v55, %v1648_v54  ;;  %v638_v14 = vsub.f32 %v1642_v53, %v1639_v52 }
 0x190   : > { %1115 = vpow2.f32 %v816_v12  ;;  %v583_v17 = vadd.f32 %v814_v2, %v550_v13  ;;  %v919_v18 = vpop.f32.mrb[4].mxu1 }
 0x191   : > { %1117 = vpow2.f32 %v815_v15  ;;  %v582_v19 = vadd.f32 %v814_v2, %v545_v16  ;;  %v963_v20 = vpop.f32.mrb[4].mxu0  ;;  %v449_v21 = vpop.f32.mrb[5].mxu1 }
 0x192   : > { %v818_v22 = vmul.f32 -1.442695, %v583_v17  ;;  %v560_v23 = vadd.f32 %v963_v20, %v919_v18  ;;  %v554_v24 = vpop.f32.mrb[5].mxu0 }
 0x193   : > { %v817_v25 = vmul.f32 -1.442695, %v582_v19  ;;  %v555_v27 = vadd.f32 %v554_v24, %v449_v21  ;;  %v641_v19 = vsub.f32 %v1668_v59, %v1664_v58 }
 0x194   : > { %1119 = vpow2.f32 %v818_v22  ;;  %v585_v28 = vadd.f32 %v814_v2, %v560_v23  ;;  %v922_v30 = vpop.f32.mrb[6].mxu1  ;;  %v643_v22 = vsub.f32 %v1684_v63, %v1680_v62 }
 0x195   : > { %1121 = vpow2.f32 %v817_v25  ;;  %v584_v31 = vadd.f32 %v814_v2, %v555_v27  ;;  %v966_v32 = vpop.f32.mrb[6].mxu0  ;;  %v459_v33 = vpop.f32.mrb[7].mxu1 }
 0x196   : > { %v820_v34 = vmul.f32 -1.442695, %v585_v28  ;;  %v570_v35 = vadd.f32 %v966_v32, %v922_v30  ;;  %v564_v36 = vpop.f32.mrb[7].mxu0 }
 0x197   : > { %v819_v37 = vmul.f32 -1.442695, %v584_v31  ;;  %v565_v38 = vadd.f32 %v564_v36, %v459_v33 }
 0x198   : > { %1123 = vpow2.f32 %v820_v34  ;;  %v587_v39 = vadd.f32 %v814_v2, %v570_v35 }
 0x199   : > { %1125 = vpow2.f32 %v819_v37  ;;  %v586_v40 = vadd.f32 %v814_v2, %v565_v38  ;;  %v637_v2 = vsub.f32 %v1636_v51, %v1633_v50 }
 0x19a   : > { %v1116_v41 = vpop.eup %1115  ;;  %v822_v42 = vmul.f32 -1.442695, %v587_v39 }
 0x19b   : > { %v1118_v43 = vpop.eup %1117  ;;  %v613_v44 = vadd.f32 1.0, %v1116_v41  ;;  %v821_v45 = vmul.f32 -1.442695, %v586_v40 }
 0x19c   : > { %v612_v46 = vadd.f32 1.0, %v1118_v43  ;;  %1127 = vpow2.f32 %v822_v42 }
 0x19d   : > { %1129 = vrcp.f32 %v613_v44 }
 0x19e   : > { %v1120_v47 = vpop.eup %1119  ;;  %1131 = vrcp.f32 %v612_v46 }
 0x19f   : > { %v1122_v48 = vpop.eup %1121  ;;  %v615_v49 = vadd.f32 1.0, %v1120_v47  ;;  %1133 = vpow2.f32 %v821_v45 }
 0x1a0   : > { %v614_v0 = vadd.f32 1.0, %v1122_v48 }
 0x1a1   : > { %1135 = vrcp.f32 %v615_v49 }
 0x1a2   : > { %v1124_v1 = vpop.eup %1123  ;;  %1137 = vrcp.f32 %v614_v0 }
 0x1a3   : > { %v1126_v3 = vpop.eup %1125  ;;  %v617_v4 = vadd.f32 1.0, %v1124_v1 }
 0x1a4   : > { %v616_v5 = vadd.f32 1.0, %v1126_v3 }
 0x1a5   : > { %1139 = vrcp.f32 %v617_v4 }
 0x1a6   : > { %v1128_v7 = vpop.eup %1127  ;;  %1141 = vrcp.f32 %v616_v5 }
 0x1a7   : > { %v1130_v8 = vpop.eup %1129  ;;  %v619_v9 = vadd.f32 1.0, %v1128_v7 }
 0x1a8   : > { %v1132_v10 = vpop.eup %1131  ;;  %v645_v12 = vmul.f32 %v1130_v8, %v637_v2 }
 0x1a9   : > { %v1134_v13 = vpop.eup %1133  ;;  %v644_v51 = vmul.f32 %v1132_v10, %v636_v6  ;;  %1143 = vrcp.f32 %v619_v9 }
 0x1aa   : > { %v653_v15 = vadd.f32 %v645_v12, %v1633_v50  ;;  %v618_v29 = vadd.f32 1.0, %v1134_v13  ;;  %v640_v50 = vsub.f32 %v1658_v57, %v1655_v56 }
 0x1ab   : > { %v1136_v16 = vpop.eup %1135  ;;  %v652_v17 = vadd.f32 %v644_v51, %v1625_v26 }
 0x1ac   : > { %v1138_v18 = vpop.eup %1137  ;;  %661 = vst [vmem:[%s1704_s11 + $0x8] sm:$0xff] %v653_v15  ;;  %v647_v53 = vmul.f32 %v1136_v16, %v639_v11  ;;  %1145 = vrcp.f32 %v618_v29 }
 0x1ad   : > { %660 = vst [vmem:[%s1704_s11] sm:$0xff] %v652_v17  ;;  %v646_v55 = vmul.f32 %v1138_v18, %v638_v14 }
 0x1ae   : > { %v655_v26 = vadd.f32 %v647_v53, %v1648_v54  ;;  %v642_v54 = vsub.f32 %v1674_v61, %v1671_v60 }
 0x1af   : > { %v1140_v59 = vpop.eup %1139  ;;  %v654_v20 = vadd.f32 %v646_v55, %v1639_v52 }
 0x1b0   : > { %v1142_v21 = vpop.eup %1141  ;;  %663 = vst [vmem:[%s1704_s11 + $0x18] sm:$0xff] %v655_v26  ;;  %v649_v23 = vmul.f32 %v1140_v59, %v641_v19 }
 0x1b1   : > { %662 = vst [vmem:[%s1704_s11 + $0x10] sm:$0xff] %v654_v20  ;;  %v648_v57 = vmul.f32 %v1142_v21, %v640_v50 }
 0x1b2   : > { %v657_v24 = vadd.f32 %v649_v23, %v1664_v58 }
 0x1b3   : > { %v1144_v25 = vpop.eup %1143  ;;  %v656_v27 = vadd.f32 %v648_v57, %v1655_v56 }
 0x1b4   : > { %665 = vst [vmem:[%s1704_s11 + $0x28] sm:$0xff] %v657_v24  ;;  %v651_v52 = vmul.f32 %v1144_v25, %v643_v22 }
 0x1b5   : > { %664 = vst [vmem:[%s1704_s11 + $0x20] sm:$0xff] %v656_v27 }
 0x1b6   : > { %v1146_v63 = vpop.eup %1145  ;;  %v659_v28 = vadd.f32 %v651_v52, %v1680_v62 }
 0x1b7   : > { %v650_v30 = vmul.f32 %v1146_v63, %v642_v54 }
 0x1b8   : > { %667 = vst [vmem:[%s1704_s11 + $0x38] sm:$0xff] %v659_v28 }
 0x1b9   : > { %v658_v56 = vadd.f32 %v650_v30, %v1671_v60 }
 0x1bb   : > { %666 = vst [vmem:[%s1704_s11 + $0x30] sm:$0xff] %v658_v56 }
 0x1bc   : > { %1276 = shalt.err (!%p1273_p11)
}
 0x1bd   : > { %s1277_s12 = scalar_lea.hbm %s1729_s15, 1024  ;;  %s1281_s17 = scalar_lea.hbm %s1781_s5, 4096 }
 0x1be   : > { %p1278_p0 = scmp.ne.s32.totalorder %s1729_s15, %s1277_s12  ;;  %p1282_p13 = scmp.lt.u32.totalorder %s1729_s15, %s1781_s5 }
 0x1bf   : > { %p1283_p3 = scmp.lt.u32.totalorder %s1281_s17, %s1277_s12  ;;  %p1285_p9 = scmp.lt.u32.totalorder %s1277_s12, %s1729_s15 }
 0x1c0   : > { %p1279_p2 = pnand %p1278_p0, %p1500_p6 }
 0x1c1   : > { %p1284_p7 = por %p1283_p3, %p1282_p13 }
 0x1c2   : > { %p1280_p10 = pneg %p1279_p2 }
 0x1c3   : > { %p1286_p12 = por %p1285_p9, %p1284_p7 }
 0x1c5   : > { %p1287_p5 = pnand %p1286_p12, %p1280_p10 }
 0x1c7   : > { %1290 = shalt.err (!%p1287_p5)
}
 0x1c8   : > { %s1350_s8 = smov 128   ;;  %s1351_s11 = smov 8  }
 0x1c9   : > { %1051 = dma.vmem_to_hbm [thread:$0]  (%p1500_p6), %s1731_s2, 1024, %s1729_s15, %s669_s22, %s1350_s8, %s1350_s8, %s1351_s11  }
 0x1ca PF: > { %p1076_p1 = scmp.ge.s32.totalorder %s1341_s21, 2  ;;  %s697_s14 = sand.u32 1, %s1329_s18  }
 0x1cb   : > { %p1808_p4 = scmp.ne.s32.totalorder %s1792_s25, 0  ;;  %s698_s16 = scalar_lea.sflag [#allocation4], %s697_s14 }
 0x1cd   : > { %p1068_p8 = pnand %p1076_p1, %p1808_p4 }
 0x1cf   : > { %1324 = dma.done.wait (!%p1068_p8), %s698_s16, 1024  }
 0x1d0   : > { %1326 = vsyncadd (!%p1068_p8), %s698_s16, 4294966272  ;;  %p22_p11 = scmp.ge.s32.totalorder %s1490_s29, 6   ;;  %s1809_s18 = smov %s1333_s19 }
 0x1d1   : > { %s1810_s19 = smov %s1337_s20  ;;  %s1811_s20 = smov %s1506_s27 }
 0x1d2   : > { %s1812_s21 = smov %s1490_s29  ;;  %24 = sbr.rel (!%p22_p11) target bundleno = 11 (0xb), region = 106 }
 0x1d9   :  { %703 = vsyncpa [#allocation3], 1 }
 0x1da   :  { %705 = vsyncpa [#allocation3 + $0x1], 1 }
 0x1db   :  { %706 = vsyncpa [#allocation6], 1 }
 0x1dc   :  { %708 = vsyncpa [#allocation6 + $0x1], 1 }
 0x1dd   :  { %709 = vsyncpa [#allocation9], 1 }
 0x1de   :  { %710 = vsyncpa [#allocation4], 1 }
 0x1df   :  { %712 = vsyncpa [#allocation4 + $0x1], 1 }

</bundles_post_ra>
